<compile_context>
chip_gen: v7x
topology: tpu7x:2x2x1
jax: 0.10.0
libtpu: 0.0.40
codegen_flags: <defaults>
</compile_context>

<pallas_src>
import functools

import jax
import jax.numpy as jnp
from jax.experimental import pallas as pl
from jax.experimental.pallas import tpu as pltpu


def _round_up(x, m):
    return ((x + m - 1) // m) * m


# ----------------------------------------------------------------------------
# Pallas kernel: fused complex conv-as-matmul, accumulating into the output.
#   out = P_r @ W_top + P_i @ W_bot + bias   (real & imag folded into columns)
# ----------------------------------------------------------------------------
def _complex_mm_kernel(pr_ref, pi_ref, wt_ref, wb_ref, b_ref, o_ref):
    k = pl.program_id(1)

    @pl.when(k == 0)
    def _init():
        # The output block index ignores k, so the block is VMEM-resident
        # across the whole k sweep: seed it with the fused bias and accumulate
        # into it directly (no scratch accumulator, no finalize pass).
        o_ref[...] = jnp.zeros_like(o_ref) + b_ref[...]

    o_ref[...] += (
        jnp.dot(pr_ref[...], wt_ref[...], preferred_element_type=jnp.float32)
        + jnp.dot(pi_ref[...], wb_ref[...], preferred_element_type=jnp.float32)
    )


def _choose_tiles(M, K, n_pad):
    """Pick (tm, m_pad, tk, k_pad, vmem_estimate) for the block matmul."""
    # Contraction: MXU-aligned. Keep the whole (padded) K resident when the two
    # bf16 block-weight matrices are small; otherwise tile at tk = 1024.
    k_full = _round_up(K, 128)
    w_bytes = 2 * 2 * k_full * n_pad * 2           # 2 mats, 2 bufs, bf16
    if k_full <= 2048 and w_bytes <= (16 << 20):
        tk, k_pad = k_full, k_full
    else:
        tk = 1024                                   # multiple of 256 (v6e/v7x MXU)
        k_pad = _round_up(K, tk)

    # Row tile: as large as possible inside a ~40 MiB VMEM budget (leaves
    # headroom on v7x's 64 MiB/TC); use >= 2 row tiles when there is enough
    # work so the "parallel" M axis can be sharded across v7x's 2 TensorCores.
    tm = min(1024, _round_up(M, 16))
    if M > 256:
        tm = min(tm, _round_up((M + 1) // 2, 16))

    def est(tm_):
        return 2 * (2 * tm_ * tk * 2               # p_r / p_i bf16 tiles (double-buffered)
                    + 2 * tk * n_pad * 2           # w_top / w_bot bf16
                    + tm_ * n_pad * 4              # f32 output tile
                    + n_pad * 4)                   # bias

    while tm > 256 and est(tm) > (40 << 20):
        tm = _round_up(tm // 2, 16)

    return tm, _round_up(M, tm), tk, k_pad, est(tm)


def _complex_matmul(p_r, p_i, w_top, w_bot, bias):
    """p_r, p_i: (M, K) bf16;  w_top, w_bot: (K, n_out) bf16;  bias: (n_out,) f32.

    Returns (M, n_out) f32 = p_r @ w_top + p_i @ w_bot + bias via a tiled Pallas
    matmul with a lane-dense (>=128 wide) padded output.
    """
    M, K = p_r.shape
    n_out = w_top.shape[1]
    n_pad = _round_up(n_out, 128)                  # lane-dense output stores

    tm, m_pad, tk, k_pad, vmem_est = _choose_tiles(M, K, n_pad)

    if m_pad != M or k_pad != K:
        pad = ((0, m_pad - M), (0, k_pad - K))
        p_r = jnp.pad(p_r, pad)
        p_i = jnp.pad(p_i, pad)
    if k_pad != K or n_pad != n_out:
        wpad = ((0, k_pad - K), (0, n_pad - n_out))
        w_top = jnp.pad(w_top, wpad)
        w_bot = jnp.pad(w_bot, wpad)
    bias2 = jnp.pad(bias, (0, n_pad - n_out)).reshape(1, n_pad)

    grid = (m_pad // tm, k_pad // tk)              # reduction axis last

    vmem_limit = int(min(max(vmem_est + (4 << 20), 16 << 20), 48 << 20))

    out = pl.pallas_call(
        _complex_mm_kernel,
        out_shape=jax.ShapeDtypeStruct((m_pad, n_pad), jnp.float32),
        grid_spec=pltpu.PrefetchScalarGridSpec(
            num_scalar_prefetch=0,
            grid=grid,
            in_specs=[
                pl.BlockSpec((tm, tk), lambda i, k: (i, k)),      # P_r tile
                pl.BlockSpec((tm, tk), lambda i, k: (i, k)),      # P_i tile
                pl.BlockSpec((tk, n_pad), lambda i, k: (k, 0)),   # [ W_re |  W_im]
                pl.BlockSpec((tk, n_pad), lambda i, k: (k, 0)),   # [-W_im |  W_re]
                pl.BlockSpec((1, n_pad), lambda i, k: (0, 0)),    # fused bias
            ],
            out_specs=pl.BlockSpec((tm, n_pad), lambda i, k: (i, 0)),
        ),
        compiler_params=pltpu.CompilerParams(
            dimension_semantics=("parallel", "arbitrary"),
            vmem_limit_bytes=vmem_limit,
        ),
    )(p_r, p_i, w_top, w_bot, bias2)

    if m_pad != M:
        out = out[:M]
    if n_pad != n_out:
        out = out[:, :n_out]
    return out


# ----------------------------------------------------------------------------
# ComplexConv2d forward
# ----------------------------------------------------------------------------
@functools.partial(jax.jit, static_argnames=("stride", "padding", "dilation"))
def complex_conv2d(x, w_re, w_im, b_re, b_im, *, stride=1, padding=0, dilation=1):
    """
    x    : (N, C_in, H, W, 2) float32   (trailing axis: real / imag)
    w_*  : (C_out, C_in, kh, kw) float32
    b_*  : (C_out,) float32
    returns (N, C_out, H_out, W_out, 2) float32
    """
    # TODO(synk): groups != 1 not implemented (module default groups=1).
    N, C_in, H, W, _ = x.shape
    C_out, _, kh, kw = w_re.shape
    K = C_in * kh * kw

    # Single bf16 patch-extraction pass over both complex planes (folded into
    # the batch axis). bf16 halves the patch-matrix HBM traffic; the one-hot
    # gather kernel is exact in bf16 (pure data movement).
    x2 = jnp.concatenate([x[..., 0], x[..., 1]], axis=0).astype(jnp.bfloat16)
    patches = jax.lax.conv_general_dilated_patches(
        x2,
        filter_shape=(kh, kw),
        window_strides=(stride, stride),
        padding=[(padding, padding), (padding, padding)],
        rhs_dilation=(dilation, dilation),
        dimension_numbers=("NCHW", "OIHW", "NHWC"),
    )                                               # (2N, Ho, Wo, K), K ordered (C_in, kh, kw)
    Ho, Wo = patches.shape[1], patches.shape[2]
    M = N * Ho * Wo
    p_r = patches[:N].reshape(M, K)                 # real-plane patches
    p_i = patches[N:].reshape(M, K)                 # imag-plane patches (no (M,2K) concat)

    # Block weights (bf16) so one fused matmul yields [real | imag]:
    #   real = P_r @ W_re - P_i @ W_im ,  imag = P_r @ W_im + P_i @ W_re
    w_re_m = w_re.reshape(C_out, K).T.astype(jnp.bfloat16)   # (K, C_out)
    w_im_m = w_im.reshape(C_out, K).T.astype(jnp.bfloat16)
    w_top = jnp.concatenate([w_re_m, w_im_m], axis=1)        # multiplies P_r
    w_bot = jnp.concatenate([-w_im_m, w_re_m], axis=1)       # multiplies P_i
    bias = jnp.concatenate([b_re - b_im, b_re + b_im]).astype(jnp.float32)

    out = _complex_matmul(p_r, p_i, w_top, w_bot, bias)      # (M, 2*C_out) f32

    # [real block | imag block] columns -> (N, C_out, Ho, Wo, 2).
    out = out.reshape(N, Ho, Wo, 2, C_out).transpose(0, 4, 1, 2, 3)
    return out


# ----------------------------------------------------------------------------
# Pure-JAX reference (independent loop-based im2col + f32 HIGHEST matmuls,
# same math as the PyTorch module) for the sanity check.
# ----------------------------------------------------------------------------
def _im2col(x, kh, kw, stride, padding, dilation):
    x = jnp.pad(x, ((0, 0), (0, 0), (padding, padding), (padding, padding)))
    N, C, Hp, Wp = x.shape
    H_out = (Hp - dilation * (kh - 1) - 1) // stride + 1
    W_out = (Wp - dilation * (kw - 1) - 1) // stride + 1

    cols = []
    for i in range(kh):
        for j in range(kw):
            r0 = i * dilation
            c0 = j * dilation
            patch = x[:, :,
                      r0: r0 + stride * (H_out - 1) + 1: stride,
                      c0: c0 + stride * (W_out - 1) + 1: stride]
            cols.append(patch)                                   # (N, C, H_out, W_out)
    col = jnp.stack(cols, axis=2)                                # (N, C, kh*kw, H_out, W_out)
    col = col.reshape(N, C * kh * kw, H_out * W_out)
    col = col.transpose(0, 2, 1).reshape(N * H_out * W_out, C * kh * kw)
    return col, H_out, W_out


def _reference(x, w_re, w_im, b_re, b_im, *, stride, padding, dilation):
    N, C_in, H, W, _ = x.shape
    C_out, _, kh, kw = w_re.shape
    p_r, H_out, W_out = _im2col(x[..., 0], kh, kw, stride, padding, dilation)
    p_i, _, _ = _im2col(x[..., 1], kh, kw, stride, padding, dilation)
    wm_re = w_re.reshape(C_out, -1).T
    wm_im = w_im.reshape(C_out, -1).T
    hi = jax.lax.Precision.HIGHEST
    real = (jnp.dot(p_r, wm_re, precision=hi) - jnp.dot(p_i, wm_im, precision=hi)
            + (b_re - b_im)[None, :])
    imag = (jnp.dot(p_i, wm_re, precision=hi) + jnp.dot(p_r, wm_im, precision=hi)
            + (b_re + b_im)[None, :])

    def to_nchw(o):
        return o.reshape(N, H_out, W_out, C_out).transpose(0, 3, 1, 2)

    return jnp.stack((to_nchw(real), to_nchw(imag)), axis=-1)


if __name__ == "__main__":
    # Small shapes consistent with the module: batch=2, in_ch=4, out_ch=8,
    # spatial=16, kernel=3, stride=1, padding=1.
    N, C_in, C_out, H, W = 2, 4, 8, 16, 16
    kh = kw = 3
    stride, padding, dilation = 1, 1, 1

    key = jax.random.PRNGKey(0)
    kx, kwr, kwi, kbr, kbi = jax.random.split(key, 5)

    x = jax.random.normal(kx, (N, C_in, H, W, 2), dtype=jnp.float32)
    fan_in = C_in * kh * kw
    bound = 1.0 / (fan_in ** 0.5)
    w_re = jax.random.uniform(kwr, (C_out, C_in, kh, kw), jnp.float32, -bound, bound)
    w_im = jax.random.uniform(kwi, (C_out, C_in, kh, kw), jnp.float32, -bound, bound)
    b_re = jax.random.uniform(kbr, (C_out,), jnp.float32, -bound, bound)
    b_im = jax.random.uniform(kbi, (C_out,), jnp.float32, -bound, bound)

    out = complex_conv2d(x, w_re, w_im, b_re, b_im,
                         stride=stride, padding=padding, dilation=dilation)
    out = jax.block_until_ready(out)
    assert out.shape == (N, C_out, H, W, 2), out.shape

    # Tight check against a reference whose inputs are bf16-quantized exactly
    # like the kernel's MXU operands (f32 math otherwise): isolates kernel logic.
    q = lambda a: a.astype(jnp.bfloat16).astype(jnp.float32)
    ref_q = _reference(q(x), q(w_re), q(w_im), b_re, b_im,
                       stride=stride, padding=padding, dilation=dilation)
    err_q = float(jnp.max(jnp.abs(out - ref_q)))
    assert err_q < 5e-3, err_q

    # Looser check against the full-f32 module math (bf16 operand rounding).
    ref_f = _reference(x, w_re, w_im, b_re, b_im,
                       stride=stride, padding=padding, dilation=dilation)
    err_f = float(jnp.max(jnp.abs(out - ref_f)))
    assert err_f < 5e-2, err_f

    print("KERNEL_OK")
</pallas_src>

<mosaic_0001>
module attributes {stable_mosaic.version = 11 : i64} {
  func.func @_complex_mm_kernel(%arg0: i32, %arg1: i32, %arg2: memref<256x128xbf16, #tpu.memory_space<vmem>>, %arg3: memref<256x128xbf16, #tpu.memory_space<vmem>>, %arg4: memref<128x128xbf16, #tpu.memory_space<vmem>>, %arg5: memref<128x128xbf16, #tpu.memory_space<vmem>>, %arg6: memref<1x128xf32, #tpu.memory_space<vmem>>, %arg7: memref<256x128xf32, #tpu.memory_space<vmem>>) attributes {dimension_semantics = [#tpu.dimension_semantics<parallel>, #tpu.dimension_semantics<arbitrary>], iteration_bounds = array<i64: 2, 1>, scalar_prefetch = 0 : i64, scratch_operands = 0 : i64, tpu.core_type = #tpu.core_type<tc>, window_params = [{transform_indices = @transform_0, window_bounds = array<i64: 256, 128>}, {transform_indices = @transform_1, window_bounds = array<i64: 256, 128>}, {transform_indices = @transform_2, window_bounds = array<i64: 128, 128>}, {transform_indices = @transform_3, window_bounds = array<i64: 128, 128>}, {pipeline_mode = #tpu.pipeline_mode<synchronous>, transform_indices = @transform_4, window_bounds = array<i64: 1, 128>}, {transform_indices = @transform_5, window_bounds = array<i64: 256, 128>}]} {
    %c0_i32 = arith.constant 0 : i32
    %0 = arith.cmpi eq, %arg1, %c0_i32 : i32
    %1 = arith.extui %0 : i1 to i32
    %c0_i32_0 = arith.constant 0 : i32
    %2 = arith.cmpi ne, %1, %c0_i32_0 : i32
    scf.if %2 {
      %cst_13 = arith.constant 0.000000e+00 : f32
      %13 = vector.broadcast %cst_13 : f32 to vector<256x128xf32>
      %c0_14 = arith.constant 0 : index
      %c0_15 = arith.constant 0 : index
      %14 = vector.load %arg6[%c0_14, %c0_15] : memref<1x128xf32, #tpu.memory_space<vmem>>, vector<1x128xf32>
      %15 = vector.broadcast %14 : vector<1x128xf32> to vector<256x128xf32>
      %16 = arith.addf %13, %15 : vector<256x128xf32>
      %c0_16 = arith.constant 0 : index
      %c0_17 = arith.constant 0 : index
      %17 = vector.load %arg7[%c0_16, %c0_17] : memref<256x128xf32, #tpu.memory_space<vmem>>, vector<256x128xf32>
      tpu.vector_store %arg7[%c0_16, %c0_17], %16 {strides = array<i32>} : memref<256x128xf32, #tpu.memory_space<vmem>>, vector<256x128xf32>,
    } else {
    }
    %c0 = arith.constant 0 : index
    %c0_1 = arith.constant 0 : index
    %3 = vector.load %arg7[%c0, %c0_1] : memref<256x128xf32, #tpu.memory_space<vmem>>, vector<256x128xf32>
    %c0_2 = arith.constant 0 : index
    %c0_3 = arith.constant 0 : index
    %4 = vector.load %arg2[%c0_2, %c0_3] : memref<256x128xbf16, #tpu.memory_space<vmem>>, vector<256x128xbf16>
    %c0_4 = arith.constant 0 : index
    %c0_5 = arith.constant 0 : index
    %5 = vector.load %arg4[%c0_4, %c0_5] : memref<128x128xbf16, #tpu.memory_space<vmem>>, vector<128x128xbf16>
    %cst = arith.constant dense<0.000000e+00> : vector<256x128xf32>
    %6 = tpu.matmul %4, %5, %cst {dimension_numbers = #tpu.dot_dimension_numbers<[1], [0], [0], [1], [0, 0, 1, 1], [], []>} : vector<256x128xbf16>, vector<128x128xbf16>, vector<256x128xf32> -> vector<256x128xf32>
    %c0_6 = arith.constant 0 : index
    %c0_7 = arith.constant 0 : index
    %7 = vector.load %arg3[%c0_6, %c0_7] : memref<256x128xbf16, #tpu.memory_space<vmem>>, vector<256x128xbf16>
    %c0_8 = arith.constant 0 : index
    %c0_9 = arith.constant 0 : index
    %8 = vector.load %arg5[%c0_8, %c0_9] : memref<128x128xbf16, #tpu.memory_space<vmem>>, vector<128x128xbf16>
    %cst_10 = arith.constant dense<0.000000e+00> : vector<256x128xf32>
    %9 = tpu.matmul %7, %8, %cst_10 {dimension_numbers = #tpu.dot_dimension_numbers<[1], [0], [0], [1], [0, 0, 1, 1], [], []>} : vector<256x128xbf16>, vector<128x128xbf16>, vector<256x128xf32> -> vector<256x128xf32>
    %10 = arith.addf %6, %9 : vector<256x128xf32>
    %11 = arith.addf %3, %10 : vector<256x128xf32>
    %c0_11 = arith.constant 0 : index
    %c0_12 = arith.constant 0 : index
    %12 = vector.load %arg7[%c0_11, %c0_12] : memref<256x128xf32, #tpu.memory_space<vmem>>, vector<256x128xf32>
    tpu.vector_store %arg7[%c0_11, %c0_12], %11 {strides = array<i32>} : memref<256x128xf32, #tpu.memory_space<vmem>>, vector<256x128xf32>,
    return
  }
  func.func @transform_0(%arg0: i32, %arg1: i32) -> (i32, i32) {
    %c0_i32 = arith.constant 0 : i32
    return %arg0, %arg1 : i32, i32
  }
  func.func @transform_1(%arg0: i32, %arg1: i32) -> (i32, i32) {
    %c0_i32 = arith.constant 0 : i32
    return %arg0, %arg1 : i32, i32
  }
  func.func @transform_2(%arg0: i32, %arg1: i32) -> (i32, i32) {
    %c0_i32 = arith.constant 0 : i32
    %c0_i32_0 = arith.constant 0 : i32
    return %arg1, %c0_i32 : i32, i32
  }
  func.func @transform_3(%arg0: i32, %arg1: i32) -> (i32, i32) {
    %c0_i32 = arith.constant 0 : i32
    %c0_i32_0 = arith.constant 0 : i32
    return %arg1, %c0_i32 : i32, i32
  }
  func.func @transform_4(%arg0: i32, %arg1: i32) -> (i32, i32) {
    %c0_i32 = arith.constant 0 : i32
    %c0_i32_0 = arith.constant 0 : i32
    %c0_i32_1 = arith.constant 0 : i32
    return %c0_i32, %c0_i32_0 : i32, i32
  }
  func.func @transform_5(%arg0: i32, %arg1: i32) -> (i32, i32) {
    %c0_i32 = arith.constant 0 : i32
    %c0_i32_0 = arith.constant 0 : i32
    return %arg0, %c0_i32 : i32, i32
  }
}

</mosaic_0001>

<bundles_post_ra>
// kernel: complex_conv2d.1
= control target key start
LH: loop header
LB: loop body
LE: loop exit
PB: predicated region body
PF: predicated region fallthrough
CT: control target
= control target key end

     0   :  { %s1654_s18 = smov 0   ;;  %s1656_s19 = smov 0   ;;  %s1849_s0 = inlined_call_operand.vmem [shape: bf16[512,128], index: 0, kind: input, shape index: {}]   ;;  %s1850_s1 = inlined_call_operand.vmem [shape: bf16[512,128], index: 1, kind: input, shape index: {}]   ;;  %s1851_s2 = inlined_call_operand.vmem [shape: bf16[128,128], index: 2, kind: input, shape index: {}]   ;;  %s1852_s3 = inlined_call_operand.vmem [shape: bf16[128,128], index: 3, kind: input, shape index: {}]   ;;  %s1853_s4 = inlined_call_operand.vmem [shape: f32[1,128], index: 4, kind: input, shape index: {}]   ;;  %s1854_s5 = inlined_call_operand.vmem [shape: f32[512,128], index: 5, kind: output, shape index: {}]  }
   0x1   :  { %s1658_s20 = smov 0  }
   0x2 LB: > { %s27_s21 = sadd.s32 1, %s1618_s19  ;;  %p1294_p0 = scmp.ge.s32.totalorder %s1622_s20, 1  ;;  %s1622_s20 = sphi %s1658_s20, %s15_s20   ;;  %s1618_s19 = sphi %s1656_s19, %s1856_s19   ;;  %s1614_s18 = sphi %s1654_s18, %s1855_s18  }
   0x3   : > { %p29_p1 = scmp.ge.s32.totalorder %s27_s21, 2  ;;  %p243_p2 = scmp.lt.s32.totalorder %s1622_s20, 3 }
   0x5   : > { %s1858_s21 = smov (%p29_p1, %s27_s21), 0  ;;  %p244_p3 = pnand %p1294_p0, %p243_p2 }
   0x6   : > { %v1552_v0 = vld [vmem:[%s1852_s3] sm:$0xff] (!%p244_p3)   ;;  %s1295_s24 = sshll.u32 (!%p244_p3), %s1614_s18, 5  ;;  %v1554_v2 = vld [vmem:[%s1852_s3 + $0x8] sm:$0xff] (!%p244_p3)   ;;  %v1556_v4 = vld [vmem:[%s1852_s3 + $0x10] sm:$0xff] (!%p244_p3)  }
   0x7   : > { %247 = sbr.rel (%p244_p3) target bundleno = 316 (0x13c), region = 40  ;;  %v1553_v1 = vld [vmem:[%s1851_s2] sm:$0xff] (!%p244_p3)   ;;  %1400 = vmatprep.subr.bf16.mxu1 (!%p244_p3), %v1552_v0  ;;  %p293_p4 = scmp.lt.s32.totalorder (!%p244_p3), %s1295_s24, 63  ;;  %v1555_v3 = vld [vmem:[%s1851_s2 + $0x8] sm:$0xff] (!%p244_p3)   ;;  %v1557_v5 = vld [vmem:[%s1851_s2 + $0x10] sm:$0xff] (!%p244_p3)  }
   0x8   : > { %1448 = vmatprep.subr.bf16.mxu0 (!%p244_p3), %v1553_v1  ;;  %1401 = vmatpush3.bf16.msra.mxu1 (!%p244_p3), %v1552_v0  ;;  %v1558_v6 = vld [vmem:[%s1852_s3 + $0x18] sm:$0xff] (!%p244_p3)   ;;  %v1560_v8 = vld [vmem:[%s1852_s3 + $0x20] sm:$0xff] (!%p244_p3)   ;;  %v1562_v10 = vld [vmem:[%s1852_s3 + $0x28] sm:$0xff] (!%p244_p3)  }
   0x9   : > { %1449 = vmatpush3.bf16.msra.mxu0 (!%p244_p3), %v1553_v1  ;;  %1402 = vmatprep.subr.bf16.mxu1 (!%p244_p3), %v1554_v2  ;;  %v1559_v7 = vld [vmem:[%s1851_s2 + $0x18] sm:$0xff] (!%p244_p3)   ;;  %v1561_v9 = vld [vmem:[%s1851_s2 + $0x20] sm:$0xff] (!%p244_p3)   ;;  %v1563_v11 = vld [vmem:[%s1851_s2 + $0x28] sm:$0xff] (!%p244_p3)  }
   0xa   : > { %1450 = vmatprep.subr.bf16.mxu0 (!%p244_p3), %v1555_v3  ;;  %v1564_v14 = vld [vmem:[%s1852_s3 + $0x30] sm:$0xff] (!%p244_p3)   ;;  %v1566_v16 = vld [vmem:[%s1852_s3 + $0x38] sm:$0xff] (!%p244_p3)   ;;  %v1769_v49 = vld [vmem:[%s1853_s4] ss:$0 sm:$0xff] (!%p244_p3) }
   0xb   : > { %v1565_v15 = vld [vmem:[%s1851_s2 + $0x30] sm:$0xff] (!%p244_p3)   ;;  %v1567_v17 = vld [vmem:[%s1851_s2 + $0x38] sm:$0xff] (!%p244_p3)  }
   0xc   : > { %1403 = vmatpush3.bf16.msra.mxu1 (!%p244_p3), %v1554_v2 }
   0xd   : > { %1451 = vmatpush3.bf16.msra.mxu0 (!%p244_p3), %v1555_v3  ;;  %1404 = vmatprep.subr.bf16.mxu1 (!%p244_p3), %v1556_v4 }
   0xe   : > { %s1860_s24 = smov (!%p293_p4, %s1295_s24), 63  ;;  %1452 = vmatprep.subr.bf16.mxu0 %v1557_v5 }
   0xf   : > { %s1296_s14 = sshll.u32 %s1860_s24, 2  ;;  %s1300_s16 = sshll.u32 %s1860_s24, 3 }
  0x10   : > { %1405 = vmatpush3.bf16.msra.mxu1 %v1556_v4  ;;  %s1708_s25 = scalar_lea.vmem %s1850_s1, %s1296_s14  ;;  %s1716_s30 = scalar_lea.vmem %s1849_s0, %s1296_s14 }
  0x11   : > { %1453 = vmatpush3.bf16.msra.mxu0 %v1557_v5  ;;  %1406 = vmatprep.subr.bf16.mxu1 %v1558_v6  ;;  %v1568_v12 = vld [vmem:[%s1708_s25] sm:$0xff]   ;;  %v1570_v18 = vld [vmem:[%s1708_s25 + $0x8] sm:$0xff]   ;;  %v1572_v20 = vld [vmem:[%s1708_s25 + $0x10] sm:$0xff]   ;;  %s1774_s26 = scalar_lea.vmem %s1854_s5, %s1300_s16 }
  0x12   : > { %1454 = vmatprep.subr.bf16.mxu0 %v1559_v7  ;;  %v1569_v13 = vld [vmem:[%s1716_s30] sm:$0xff]   ;;  %1416 = vmatprep.mubr.bf16.mxu1 %v1568_v12  ;;  %v1571_v19 = vld [vmem:[%s1716_s30 + $0x8] sm:$0xff]   ;;  %v1573_v21 = vld [vmem:[%s1716_s30 + $0x10] sm:$0xff]  }
  0x13   : > { %1464 = vmatprep.mubr.bf16.mxu0 %v1569_v13  ;;  %v1574_v22 = vld [vmem:[%s1708_s25 + $0x18] sm:$0xff]   ;;  %v1576_v24 = vld [vmem:[%s1708_s25 + $0x20] sm:$0xff]   ;;  %v1578_v26 = vld [vmem:[%s1708_s25 + $0x28] sm:$0xff]  }
  0x14   : > { %1407 = vmatpush3.bf16.msra.mxu1 %v1558_v6  ;;  %v1575_v23 = vld [vmem:[%s1716_s30 + $0x18] sm:$0xff]   ;;  %v1577_v25 = vld [vmem:[%s1716_s30 + $0x20] sm:$0xff]   ;;  %v1579_v27 = vld [vmem:[%s1716_s30 + $0x28] sm:$0xff]  }
  0x15   : > { %1455 = vmatpush3.bf16.msra.mxu0 %v1559_v7  ;;  %1408 = vmatprep.subr.bf16.mxu1 %v1560_v8  ;;  %v1580_v28 = vld [vmem:[%s1708_s25 + $0x30] sm:$0xff]   ;;  %v1582_v30 = vld [vmem:[%s1708_s25 + $0x38] sm:$0xff]   ;;  %v1584_v32 = vld [vmem:[%s1708_s25 + $0x40] sm:$0xff]  }
  0x16   : > { %1456 = vmatprep.subr.bf16.mxu0 %v1561_v9  ;;  %v1581_v29 = vld [vmem:[%s1716_s30 + $0x30] sm:$0xff]   ;;  %v1583_v31 = vld [vmem:[%s1716_s30 + $0x38] sm:$0xff]   ;;  %v1585_v33 = vld [vmem:[%s1716_s30 + $0x40] sm:$0xff]  }
  0x17   : > { %v1586_v34 = vld [vmem:[%s1708_s25 + $0x48] sm:$0xff]   ;;  %v1588_v36 = vld [vmem:[%s1708_s25 + $0x50] sm:$0xff]   ;;  %v1590_v38 = vld [vmem:[%s1708_s25 + $0x58] sm:$0xff]  }
  0x18   : > { %1409 = vmatpush3.bf16.msra.mxu1 %v1560_v8  ;;  %v1587_v35 = vld [vmem:[%s1716_s30 + $0x48] sm:$0xff]   ;;  %v1589_v37 = vld [vmem:[%s1716_s30 + $0x50] sm:$0xff]   ;;  %v1591_v39 = vld [vmem:[%s1716_s30 + $0x58] sm:$0xff]  }
  0x19   : > { %1457 = vmatpush3.bf16.msra.mxu0 %v1561_v9  ;;  %1410 = vmatprep.subr.bf16.mxu1 %v1562_v10  ;;  %v1592_v40 = vld [vmem:[%s1708_s25 + $0x60] sm:$0xff]   ;;  %v1594_v42 = vld [vmem:[%s1708_s25 + $0x68] sm:$0xff]   ;;  %v1596_v44 = vld [vmem:[%s1708_s25 + $0x70] sm:$0xff]  }
  0x1a   : > { %1458 = vmatprep.subr.bf16.mxu0 %v1563_v11  ;;  %v1593_v41 = vld [vmem:[%s1716_s30 + $0x60] sm:$0xff]   ;;  %v1595_v43 = vld [vmem:[%s1716_s30 + $0x68] sm:$0xff]   ;;  %v1597_v45 = vld [vmem:[%s1716_s30 + $0x70] sm:$0xff]  }
  0x1b   : > { %v1598_v46 = vld [vmem:[%s1708_s25 + $0x78] sm:$0xff]  }
  0x1c   : > { %1411 = vmatpush3.bf16.msra.mxu1 %v1562_v10  ;;  %v1599_v47 = vld [vmem:[%s1716_s30 + $0x78] sm:$0xff]  }
  0x1d   : > { %1459 = vmatpush3.bf16.msra.mxu0 %v1563_v11  ;;  %1412 = vmatprep.subr.bf16.mxu1 %v1564_v14 }
  0x1e   : > { %1460 = vmatprep.subr.bf16.mxu0 %v1565_v15 }
  0x20   : > { %1413 = vmatpush3.bf16.msra.mxu1 %v1564_v14 }
  0x21   : > { %1461 = vmatpush3.bf16.msra.mxu0 %v1565_v15  ;;  %1414 = vmatprep.subr.bf16.mxu1 %v1566_v16 }
  0x22   : > { %1462 = vmatprep.subr.bf16.mxu0 %v1567_v17 }
  0x24   : > { %1415 = vmatpush3.bf16.msra.mxu1 %v1566_v16 }
  0x25   : > { %1463 = vmatpush3.bf16.msra.mxu0 %v1567_v17 }
  0x27   : > { %1417 = vmatmul.mubr.bf16.vlgmr.msra.gmra.mrb[0].mxu1 %v1570_v18 }
  0x28   : > { %1465 = vmatmul.mubr.bf16.vlgmr.msra.gmra.mrb[0].mxu0 %v1571_v19  ;;  %1420 = vmatprep.mubr.bf16.mxu1 %v1572_v20 }
  0x29   : > { %1468 = vmatprep.mubr.bf16.mxu0 %v1573_v21 }
  0x2f   : > { %1421 = vmatmul.mubr.bf16.gmra.mrb[4].mxu1 %v1574_v22 }
  0x30   : > { %1469 = vmatmul.mubr.bf16.gmra.mrb[4].mxu0 %v1575_v23  ;;  %1424 = vmatprep.mubr.bf16.mxu1 %v1576_v24 }
  0x31   : > { %1472 = vmatprep.mubr.bf16.mxu0 %v1577_v25 }
  0x37   : > { %1425 = vmatmul.mubr.bf16.gmra.mrb[8].mxu1 %v1578_v26 }
  0x38   : > { %1473 = vmatmul.mubr.bf16.gmra.mrb[8].mxu0 %v1579_v27  ;;  %1428 = vmatprep.mubr.bf16.mxu1 %v1580_v28 }
  0x39   : > { %1476 = vmatprep.mubr.bf16.mxu0 %v1581_v29 }
  0x3f   : > { %1429 = vmatmul.mubr.bf16.gmra.mrb[12].mxu1 %v1582_v30 }
  0x40   : > { %1477 = vmatmul.mubr.bf16.gmra.mrb[12].mxu0 %v1583_v31  ;;  %1432 = vmatprep.mubr.bf16.mxu1 %v1584_v32 }
  0x41   : > { %1480 = vmatprep.mubr.bf16.mxu0 %v1585_v33 }
  0x47   : > { %1433 = vmatmul.mubr.bf16.gmra.mrb[16].mxu1 %v1586_v34 }
  0x48   : > { %1481 = vmatmul.mubr.bf16.gmra.mrb[16].mxu0 %v1587_v35  ;;  %1436 = vmatprep.mubr.bf16.mxu1 %v1588_v36 }
  0x49   : > { %1484 = vmatprep.mubr.bf16.mxu0 %v1589_v37 }
  0x4f   : > { %1437 = vmatmul.mubr.bf16.gmra.mrb[20].mxu1 %v1590_v38 }
  0x50   : > { %1485 = vmatmul.mubr.bf16.gmra.mrb[20].mxu0 %v1591_v39  ;;  %1440 = vmatprep.mubr.bf16.mxu1 %v1592_v40 }
  0x51   : > { %1488 = vmatprep.mubr.bf16.mxu0 %v1593_v41 }
  0x57   : > { %1441 = vmatmul.mubr.bf16.gmra.mrb[24].mxu1 %v1594_v42 }
  0x58   : > { %1489 = vmatmul.mubr.bf16.gmra.mrb[24].mxu0 %v1595_v43  ;;  %1444 = vmatprep.mubr.bf16.mxu1 %v1596_v44 }
  0x59   : > { %1492 = vmatprep.mubr.bf16.mxu0 %v1597_v45 }
  0x5f   : > { %1445 = vmatmul.mubr.bf16.gmra.mrb[28].mxu1 %v1598_v46 }
  0x60   : > { %1493 = vmatmul.mubr.bf16.gmra.mrb[28].mxu0 %v1599_v47 }
  0xfa   : > { %v1418_v48 = vpop.f32.mrb[0].mxu1 }
  0xfb   : > { %v1466_v50 = vpop.f32.mrb[0].mxu0  ;;  %v679_v51 = vpop.f32.mrb[1].mxu1 }
  0xfc   : > { %v993_v52 = vadd.f32 %v1466_v50, %v1418_v48  ;;  %v984_v53 = vpop.f32.mrb[1].mxu0  ;;  %v1419_v54 = vpop.f32.mrb[2].mxu1 }
  0xfd   : > { %v985_v55 = vadd.f32 %v984_v53, %v679_v51  ;;  %v1467_v56 = vpop.f32.mrb[2].mxu0  ;;  %v682_v57 = vpop.f32.mrb[3].mxu1 }
  0xfe   : > { %v1113_v58 = vadd.f32 %v1769_v49, %v993_v52  ;;  %v996_v59 = vadd.f32 %v1467_v56, %v1419_v54  ;;  %v987_v60 = vpop.f32.mrb[3].mxu0 }
  0xff   : > { %v1111_v61 = vadd.f32 %v1769_v49, %v985_v55  ;;  %v988_v62 = vadd.f32 %v987_v60, %v682_v57 }
 0x100   : > { %1145 = vst [vmem:[%s1774_s26 + $0x10] sm:$0xff] %v1113_v58  ;;  %v1114_v63 = vadd.f32 %v1769_v49, %v996_v59 }
 0x101   : > { %1143 = vst [vmem:[%s1774_s26] sm:$0xff] %v1111_v61  ;;  %v1112_v0 = vadd.f32 %v1769_v49, %v988_v62 }
 0x102   : > { %1146 = vst [vmem:[%s1774_s26 + $0x18] sm:$0xff] %v1114_v63  ;;  %v1422_v1 = vpop.f32.mrb[4].mxu1 }
 0x103   : > { %1144 = vst [vmem:[%s1774_s26 + $0x8] sm:$0xff] %v1112_v0  ;;  %v1470_v2 = vpop.f32.mrb[4].mxu0  ;;  %v695_v3 = vpop.f32.mrb[5].mxu1 }
 0x104   : > { %v1009_v4 = vadd.f32 %v1470_v2, %v1422_v1  ;;  %v1000_v5 = vpop.f32.mrb[5].mxu0  ;;  %v1423_v6 = vpop.f32.mrb[6].mxu1 }
 0x105   : > { %v1001_v7 = vadd.f32 %v1000_v5, %v695_v3  ;;  %v1471_v8 = vpop.f32.mrb[6].mxu0  ;;  %v698_v9 = vpop.f32.mrb[7].mxu1 }
 0x106   : > { %v1117_v10 = vadd.f32 %v1769_v49, %v1009_v4  ;;  %v1012_v11 = vadd.f32 %v1471_v8, %v1423_v6  ;;  %v1003_v12 = vpop.f32.mrb[7].mxu0 }
 0x107   : > { %v1115_v13 = vadd.f32 %v1769_v49, %v1001_v7  ;;  %v1004_v14 = vadd.f32 %v1003_v12, %v698_v9 }
 0x108   : > { %1149 = vst [vmem:[%s1774_s26 + $0x30] sm:$0xff] %v1117_v10  ;;  %v1118_v15 = vadd.f32 %v1769_v49, %v1012_v11 }
 0x109   : > { %1147 = vst [vmem:[%s1774_s26 + $0x20] sm:$0xff] %v1115_v13  ;;  %v1116_v16 = vadd.f32 %v1769_v49, %v1004_v14 }
 0x10a   : > { %1150 = vst [vmem:[%s1774_s26 + $0x38] sm:$0xff] %v1118_v15  ;;  %v1426_v17 = vpop.f32.mrb[8].mxu1 }
 0x10b   : > { %1148 = vst [vmem:[%s1774_s26 + $0x28] sm:$0xff] %v1116_v16  ;;  %v1474_v18 = vpop.f32.mrb[8].mxu0  ;;  %v711_v19 = vpop.f32.mrb[9].mxu1 }
 0x10c   : > { %v1025_v20 = vadd.f32 %v1474_v18, %v1426_v17  ;;  %v1016_v21 = vpop.f32.mrb[9].mxu0  ;;  %v1427_v22 = vpop.f32.mrb[10].mxu1 }
 0x10d   : > { %v1017_v23 = vadd.f32 %v1016_v21, %v711_v19  ;;  %v1475_v24 = vpop.f32.mrb[10].mxu0  ;;  %v714_v25 = vpop.f32.mrb[11].mxu1 }
 0x10e   : > { %v1121_v26 = vadd.f32 %v1769_v49, %v1025_v20  ;;  %v1028_v27 = vadd.f32 %v1475_v24, %v1427_v22  ;;  %v1019_v28 = vpop.f32.mrb[11].mxu0 }
 0x10f   : > { %v1119_v29 = vadd.f32 %v1769_v49, %v1017_v23  ;;  %v1020_v30 = vadd.f32 %v1019_v28, %v714_v25 }
 0x110   : > { %1153 = vst [vmem:[%s1774_s26 + $0x50] sm:$0xff] %v1121_v26  ;;  %v1122_v31 = vadd.f32 %v1769_v49, %v1028_v27 }
 0x111   : > { %1151 = vst [vmem:[%s1774_s26 + $0x40] sm:$0xff] %v1119_v29  ;;  %v1120_v32 = vadd.f32 %v1769_v49, %v1020_v30 }
 0x112   : > { %1154 = vst [vmem:[%s1774_s26 + $0x58] sm:$0xff] %v1122_v31  ;;  %v1430_v33 = vpop.f32.mrb[12].mxu1 }
 0x113   : > { %1152 = vst [vmem:[%s1774_s26 + $0x48] sm:$0xff] %v1120_v32  ;;  %v1478_v34 = vpop.f32.mrb[12].mxu0  ;;  %v727_v35 = vpop.f32.mrb[13].mxu1 }
 0x114   : > { %v1041_v36 = vadd.f32 %v1478_v34, %v1430_v33  ;;  %v1032_v37 = vpop.f32.mrb[13].mxu0  ;;  %v1431_v38 = vpop.f32.mrb[14].mxu1 }
 0x115   : > { %v1033_v39 = vadd.f32 %v1032_v37, %v727_v35  ;;  %v1479_v40 = vpop.f32.mrb[14].mxu0  ;;  %v730_v41 = vpop.f32.mrb[15].mxu1 }
 0x116   : > { %v1125_v42 = vadd.f32 %v1769_v49, %v1041_v36  ;;  %v1044_v43 = vadd.f32 %v1479_v40, %v1431_v38  ;;  %v1035_v44 = vpop.f32.mrb[15].mxu0 }
 0x117   : > { %v1123_v45 = vadd.f32 %v1769_v49, %v1033_v39  ;;  %v1036_v46 = vadd.f32 %v1035_v44, %v730_v41 }
 0x118   : > { %1157 = vst [vmem:[%s1774_s26 + $0x70] sm:$0xff] %v1125_v42  ;;  %v1126_v47 = vadd.f32 %v1769_v49, %v1044_v43 }
 0x119   : > { %1155 = vst [vmem:[%s1774_s26 + $0x60] sm:$0xff] %v1123_v45  ;;  %v1124_v48 = vadd.f32 %v1769_v49, %v1036_v46 }
 0x11a   : > { %1158 = vst [vmem:[%s1774_s26 + $0x78] sm:$0xff] %v1126_v47  ;;  %v1434_v50 = vpop.f32.mrb[16].mxu1 }
 0x11b   : > { %1156 = vst [vmem:[%s1774_s26 + $0x68] sm:$0xff] %v1124_v48  ;;  %v1482_v51 = vpop.f32.mrb[16].mxu0  ;;  %v743_v52 = vpop.f32.mrb[17].mxu1 }
 0x11c   : > { %v1057_v53 = vadd.f32 %v1482_v51, %v1434_v50  ;;  %v1048_v54 = vpop.f32.mrb[17].mxu0  ;;  %v1435_v55 = vpop.f32.mrb[18].mxu1 }
 0x11d   : > { %v1049_v56 = vadd.f32 %v1048_v54, %v743_v52  ;;  %v1483_v57 = vpop.f32.mrb[18].mxu0  ;;  %v746_v58 = vpop.f32.mrb[19].mxu1 }
 0x11e   : > { %v1129_v59 = vadd.f32 %v1769_v49, %v1057_v53  ;;  %v1060_v60 = vadd.f32 %v1483_v57, %v1435_v55  ;;  %v1051_v61 = vpop.f32.mrb[19].mxu0 }
 0x11f   : > { %v1127_v62 = vadd.f32 %v1769_v49, %v1049_v56  ;;  %v1052_v63 = vadd.f32 %v1051_v61, %v746_v58 }
 0x120   : > { %1161 = vst [vmem:[%s1774_s26 + $0x90] sm:$0xff] %v1129_v59  ;;  %v1130_v0 = vadd.f32 %v1769_v49, %v1060_v60 }
 0x121   : > { %1159 = vst [vmem:[%s1774_s26 + $0x80] sm:$0xff] %v1127_v62  ;;  %v1128_v1 = vadd.f32 %v1769_v49, %v1052_v63 }
 0x122   : > { %1162 = vst [vmem:[%s1774_s26 + $0x98] sm:$0xff] %v1130_v0  ;;  %v1438_v2 = vpop.f32.mrb[20].mxu1 }
 0x123   : > { %1160 = vst [vmem:[%s1774_s26 + $0x88] sm:$0xff] %v1128_v1  ;;  %v1486_v3 = vpop.f32.mrb[20].mxu0  ;;  %v759_v4 = vpop.f32.mrb[21].mxu1 }
 0x124   : > { %v1073_v5 = vadd.f32 %v1486_v3, %v1438_v2  ;;  %v1064_v6 = vpop.f32.mrb[21].mxu0  ;;  %v1439_v7 = vpop.f32.mrb[22].mxu1 }
 0x125   : > { %v1065_v8 = vadd.f32 %v1064_v6, %v759_v4  ;;  %v1487_v9 = vpop.f32.mrb[22].mxu0  ;;  %v762_v10 = vpop.f32.mrb[23].mxu1 }
 0x126   : > { %v1133_v11 = vadd.f32 %v1769_v49, %v1073_v5  ;;  %v1076_v12 = vadd.f32 %v1487_v9, %v1439_v7  ;;  %v1067_v13 = vpop.f32.mrb[23].mxu0 }
 0x127   : > { %v1131_v14 = vadd.f32 %v1769_v49, %v1065_v8  ;;  %v1068_v15 = vadd.f32 %v1067_v13, %v762_v10 }
 0x128   : > { %1165 = vst [vmem:[%s1774_s26 + $0xb0] sm:$0xff] %v1133_v11  ;;  %v1134_v16 = vadd.f32 %v1769_v49, %v1076_v12 }
 0x129   : > { %1163 = vst [vmem:[%s1774_s26 + $0xa0] sm:$0xff] %v1131_v14  ;;  %v1132_v17 = vadd.f32 %v1769_v49, %v1068_v15 }
 0x12a   : > { %1166 = vst [vmem:[%s1774_s26 + $0xb8] sm:$0xff] %v1134_v16  ;;  %v1442_v18 = vpop.f32.mrb[24].mxu1 }
 0x12b   : > { %1164 = vst [vmem:[%s1774_s26 + $0xa8] sm:$0xff] %v1132_v17  ;;  %v1490_v19 = vpop.f32.mrb[24].mxu0  ;;  %v775_v20 = vpop.f32.mrb[25].mxu1 }
 0x12c   : > { %v1089_v21 = vadd.f32 %v1490_v19, %v1442_v18  ;;  %v1080_v22 = vpop.f32.mrb[25].mxu0  ;;  %v1443_v23 = vpop.f32.mrb[26].mxu1 }
 0x12d   : > { %v1081_v24 = vadd.f32 %v1080_v22, %v775_v20  ;;  %v1491_v25 = vpop.f32.mrb[26].mxu0  ;;  %v778_v26 = vpop.f32.mrb[27].mxu1 }
 0x12e   : > { %v1137_v27 = vadd.f32 %v1769_v49, %v1089_v21  ;;  %v1092_v28 = vadd.f32 %v1491_v25, %v1443_v23  ;;  %v1083_v29 = vpop.f32.mrb[27].mxu0 }
 0x12f   : > { %v1135_v30 = vadd.f32 %v1769_v49, %v1081_v24  ;;  %v1084_v31 = vadd.f32 %v1083_v29, %v778_v26 }
 0x130   : > { %1169 = vst [vmem:[%s1774_s26 + $0xd0] sm:$0xff] %v1137_v27  ;;  %v1138_v32 = vadd.f32 %v1769_v49, %v1092_v28 }
 0x131   : > { %1167 = vst [vmem:[%s1774_s26 + $0xc0] sm:$0xff] %v1135_v30  ;;  %v1136_v33 = vadd.f32 %v1769_v49, %v1084_v31 }
 0x132   : > { %1170 = vst [vmem:[%s1774_s26 + $0xd8] sm:$0xff] %v1138_v32  ;;  %v1446_v34 = vpop.f32.mrb[28].mxu1 }
 0x133   : > { %1168 = vst [vmem:[%s1774_s26 + $0xc8] sm:$0xff] %v1136_v33  ;;  %v1494_v35 = vpop.f32.mrb[28].mxu0  ;;  %v791_v36 = vpop.f32.mrb[29].mxu1 }
 0x134   : > { %v1105_v37 = vadd.f32 %v1494_v35, %v1446_v34  ;;  %v1096_v38 = vpop.f32.mrb[29].mxu0  ;;  %v1447_v39 = vpop.f32.mrb[30].mxu1 }
 0x135   : > { %v1097_v40 = vadd.f32 %v1096_v38, %v791_v36  ;;  %v1495_v41 = vpop.f32.mrb[30].mxu0  ;;  %v794_v42 = vpop.f32.mrb[31].mxu1 }
 0x136   : > { %v1141_v43 = vadd.f32 %v1769_v49, %v1105_v37  ;;  %v1108_v44 = vadd.f32 %v1495_v41, %v1447_v39  ;;  %v1099_v45 = vpop.f32.mrb[31].mxu0 }
 0x137   : > { %v1139_v46 = vadd.f32 %v1769_v49, %v1097_v40  ;;  %v1100_v47 = vadd.f32 %v1099_v45, %v794_v42 }
 0x138   : > { %1173 = vst [vmem:[%s1774_s26 + $0xf0] sm:$0xff] %v1141_v43  ;;  %v1142_v48 = vadd.f32 %v1769_v49, %v1108_v44 }
 0x139   : > { %1171 = vst [vmem:[%s1774_s26 + $0xe0] sm:$0xff] %v1139_v46  ;;  %v1140_v50 = vadd.f32 %v1769_v49, %v1100_v47 }
 0x13a   : > { %1174 = vst [vmem:[%s1774_s26 + $0xf8] sm:$0xff] %v1142_v48 }
 0x13b   : > { %1172 = vst [vmem:[%s1774_s26 + $0xe8] sm:$0xff] %v1140_v50 }
 0x13c PF: > { %s15_s20 = sadd.s32 1, %s1622_s20   ;;  %s1855_s18 = smov %s1618_s19 }
 0x13d   : > { %p12_p5 = scmp.ge.s32.totalorder %s15_s20, 4   ;;  %s1856_s19 = smov %s1858_s21 }
 0x13f   :  { %14 = sbr.rel (!%p12_p5) target bundleno = 2 (0x2), region = 83 }

</bundles_post_ra>
